<compile_context>
chip_gen: v5e
topology: v5e:2x2
jax: 0.10.0
libtpu: 0.0.40
codegen_flags: <defaults>
</compile_context>

<pallas_src>
import functools

import jax
import jax.numpy as jnp
from jax.experimental import pallas as pl
from jax.experimental.pallas import tpu as pltpu

_LANES = 128


def _relu_kernel(x_ref, o_ref):
    # Elementwise max(x, 0) on the VPU.
    o_ref[...] = jnp.maximum(x_ref[...], jnp.zeros((), x_ref.dtype))


def _round_up(a: int, b: int) -> int:
    return ((a + b - 1) // b) * b


@functools.partial(jax.jit, static_argnames=("tile_rows", "donate_input"))
def pallas_relu(x: jax.Array, *, tile_rows: int = 4096,
                donate_input: bool = False) -> jax.Array:
    """ReLU(x) = max(x, 0), exact PyTorch F.relu semantics (same shape/dtype)."""
    orig_shape = x.shape
    orig_dtype = x.dtype
    n = x.size
    if n == 0:
        return x

    itemsize = jnp.dtype(orig_dtype).itemsize
    # Sublane packing granule: f32 -> 8 rows, bf16 -> 16, int8/fp8 -> 32.
    sublane_mult = 8 * max(1, 4 // itemsize)
    assert tile_rows % sublane_mult == 0, (
        f"tile_rows={tile_rows} must be a multiple of {sublane_mult} "
        f"for dtype {orig_dtype}")

    # Pad the flat length only up to the minimal (sublane, 128) granule; the
    # common divisible case adds no pad and no trailing-slice copy.
    granule = sublane_mult * _LANES
    n_pad = _round_up(n, granule)
    x_flat = jnp.ravel(x)
    if n_pad != n:
        x_flat = jnp.pad(x_flat, (0, n_pad - n))

    rows = n_pad // _LANES
    x2d = x_flat.reshape(rows, _LANES)

    # Clamp the tile to the data, then ensure >= 2 grid steps when possible so
    # the "parallel" axis shards across v7x's 2 TensorCores.
    tr = min(tile_rows, rows)
    if pl.cdiv(rows, tr) == 1 and rows > sublane_mult:
        tr = _round_up(pl.cdiv(rows, 2), sublane_mult)
    num_blocks = pl.cdiv(rows, tr)

    block_bytes = tr * _LANES * itemsize
    # in + out, double-buffered, plus headroom; capped so it stays within the
    # scoped-VMEM budget of every generation (v5e default can be raised).
    vmem_limit = min(max(4 * block_bytes + (2 << 20), 16 << 20), 32 << 20)

    kwargs = {}
    if donate_input:
        # Alias the input buffer as the output.  Only enable when the caller's
        # x is dead/donated; otherwise XLA copy-insertion would add an extra
        # full HBM pass to protect the live input.
        kwargs["input_output_aliases"] = {0: 0}

    out2d = pl.pallas_call(
        _relu_kernel,
        out_shape=jax.ShapeDtypeStruct((rows, _LANES), orig_dtype),
        grid_spec=pltpu.PrefetchScalarGridSpec(
            num_scalar_prefetch=0,
            grid=(num_blocks,),
            in_specs=[pl.BlockSpec((tr, _LANES), lambda i: (i, 0))],
            out_specs=pl.BlockSpec((tr, _LANES), lambda i: (i, 0)),
        ),
        compiler_params=pltpu.CompilerParams(
            dimension_semantics=("parallel",),
            vmem_limit_bytes=vmem_limit,
        ),
        cost_estimate=pl.CostEstimate(
            flops=n, transcendentals=0, bytes_accessed=2 * n * itemsize),
        **kwargs,
    )(x2d)

    if n_pad == n:
        return out2d.reshape(orig_shape)
    return out2d.reshape(-1)[:n].reshape(orig_shape)


if __name__ == "__main__":
    key = jax.random.PRNGKey(0)
    # Small NCHW input consistent with a ViT/conv pipeline: batch=2, C=4, H=W=16.
    x = jax.random.normal(key, (2, 4, 16, 16), dtype=jnp.float32)

    y = pallas_relu(x)
    jax.block_until_ready(y)
    y_ref = jnp.maximum(x, 0.0)
    assert y.shape == x.shape and y.dtype == x.dtype
    assert jnp.allclose(y, y_ref)

    # Non-divisible shape: exercises the pad + ragged-last-block path.
    x2 = jax.random.normal(jax.random.PRNGKey(1), (3, 5, 7), dtype=jnp.float32)
    y2 = pallas_relu(x2)
    jax.block_until_ready(y2)
    assert jnp.allclose(y2, jnp.maximum(x2, 0.0))

    # bf16: exercises the sublane-packing (multiple-of-16) path.
    x3 = jax.random.normal(jax.random.PRNGKey(2), (2, 4, 16, 16),
                           dtype=jnp.bfloat16)
    y3 = pallas_relu(x3)
    jax.block_until_ready(y3)
    assert y3.dtype == jnp.bfloat16
    assert jnp.array_equal(y3, jnp.maximum(x3, jnp.bfloat16(0)))

    print("KERNEL_OK")
</pallas_src>

<mosaic_0001>
module attributes {stable_mosaic.version = 11 : i64} {
  func.func @_relu_kernel(%arg0: i32, %arg1: memref<8x128xf32, #tpu.memory_space<vmem>>, %arg2: memref<8x128xf32, #tpu.memory_space<vmem>>) attributes {dimension_semantics = [#tpu.dimension_semantics<parallel>], iteration_bounds = array<i64: 2>, scalar_prefetch = 0 : i64, scratch_operands = 0 : i64, tpu.core_type = #tpu.core_type<tc>, window_params = [{transform_indices = @transform_0, window_bounds = array<i64: 8, 128>}, {transform_indices = @transform_1, window_bounds = array<i64: 8, 128>}]} {
    %c0 = arith.constant 0 : index
    %c0_0 = arith.constant 0 : index
    %0 = vector.load %arg1[%c0, %c0_0] : memref<8x128xf32, #tpu.memory_space<vmem>>, vector<8x128xf32>
    %cst = arith.constant 0.000000e+00 : f32
    %1 = vector.broadcast %cst : f32 to vector<8x128xf32>
    %2 = arith.maximumf %0, %1 : vector<8x128xf32>
    %c0_1 = arith.constant 0 : index
    %c0_2 = arith.constant 0 : index
    %3 = vector.load %arg2[%c0_1, %c0_2] : memref<8x128xf32, #tpu.memory_space<vmem>>, vector<8x128xf32>
    tpu.vector_store %arg2[%c0_1, %c0_2], %2 {strides = array<i32>} : memref<8x128xf32, #tpu.memory_space<vmem>>, vector<8x128xf32>,
    return
  }
  func.func @transform_0(%arg0: i32) -> (i32, i32) {
    %c0_i32 = arith.constant 0 : i32
    %c0_i32_0 = arith.constant 0 : i32
    return %arg0, %c0_i32 : i32, i32
  }
  func.func @transform_1(%arg0: i32) -> (i32, i32) {
    %c0_i32 = arith.constant 0 : i32
    %c0_i32_0 = arith.constant 0 : i32
    return %arg0, %c0_i32 : i32, i32
  }
}

</mosaic_0001>

<bundles_post_ra>
// kernel: pallas_relu.1
= control target key start
LH: loop header
LB: loop body
LE: loop exit
PB: predicated region body
PF: predicated region fallthrough
CT: control target
= control target key end

     0   :  { %s189_s6 = smov 0   ;;  %s209_s0 = inlined_call_operand.vmem [shape: f32[16,128], index: 0, kind: input, shape index: {}]   ;;  %s210_s1 = inlined_call_operand.vmem [shape: f32[16,128], index: 1, kind: output, shape index: {}]  }
   0x1 LB: > { %s168_s7 = sadd.s32 4294967295, %s191_s6   ;;  %p172_p0 = scmp.ge.s32.totalorder %s191_s6, 1  ;;  %s191_s6 = sphi %s189_s6, %s11_s6  }
   0x2   : > { %p86_p1 = scmp.lt.s32.totalorder %s191_s6, 3 }
   0x4   : > { %p87_p2 = pnand %p172_p0, %p86_p1 }
   0x5   : > { %p104_p3 = scmp.lt.s32.totalorder (!%p87_p2), %s168_s7, 1 }
   0x6   : > { %90 = sbr.rel (%p87_p2) target bundleno = 18 (0x12), region = 24 }
   0xb   : > { %s212_s7 = smov (!%p104_p3, %s168_s7), 1 }
   0xc   : > { %s173_s8 = sshll.u32 %s212_s7, 3 }
   0xd   : > { %s107_s11 = scalar_lea.vmem %s209_s0, %s173_s8  ;;  %s111_s14 = scalar_lea.vmem %s210_s1, %s173_s8 }
   0xe   : > { %v112_v0 = vld [vmem:[%s107_s11] sm:$0xff] }
   0xf   : > { %v113_v1 = vmax.f32 %v112_v0, 0.0 }
  0x11   : > { %114 = vst [vmem:[%s111_s14] sm:$0xff] %v113_v1 }
  0x12 PF: > { %s11_s6 = sadd.s32 1, %s191_s6  }
  0x13   : > { %p8_p4 = scmp.ge.s32.totalorder %s11_s6, 4  }
  0x15   :  { %10 = sbr.rel (!%p8_p4) target bundleno = 1 (0x1), region = 54 }

</bundles_post_ra>
